<compile_context>
chip_gen: v7x
topology: tpu7x:2x2x1
jax: 0.10.0
libtpu: 0.0.40
codegen_flags: <defaults>
</compile_context>

<pallas_src>
import math
import jax
import jax.numpy as jnp
from jax.experimental import pallas as pl
from jax.experimental.pallas import tpu as pltpu


# ---------------------------------------------------------------------------
# Kernel: fused 3-layer ensemble MLP (block-diagonal), bf16 weights, f32 accum.
# ---------------------------------------------------------------------------
def vectorized_q_kernel(s_ref, a_ref, w1s_ref, w1a_ref, w2_ref, w3t_ref, b_ref,
                        out_ref):
    # s_ref  : [Bt, state_dim] f32     a_ref  : [Bt, action_dim] f32
    # w1s_ref: [state_dim,  E*H] bf16  w1a_ref: [action_dim, E*H] bf16
    # w2_ref : [E*H, E*H] bf16 (block-diagonal)
    # w3t_ref: [E, E*H]   bf16 (block-diagonal final layer, pre-transposed)
    # b_ref  : [2+E, E*H] f32  (row0=b1, row1=b2, rows 2..2+E col0 = b3)
    # out_ref: [E, Bt] f32
    E = out_ref.shape[0]
    f32 = jnp.float32
    bf16 = jnp.bfloat16

    b = b_ref[...]                                     # [2+E, E*H] f32

    # layer 1: (state | action) @ W1 + b1, ReLU  -- concat avoided by splitting W1
    h1 = (jnp.dot(s_ref[...].astype(bf16), w1s_ref[...], preferred_element_type=f32)
          + jnp.dot(a_ref[...].astype(bf16), w1a_ref[...], preferred_element_type=f32)
          + b[0:1, :])
    h1 = jnp.maximum(h1, 0.0)                          # [Bt, E*H] f32

    # layer 2: block-diagonal fused matmul + bias, ReLU
    h2 = jnp.dot(h1.astype(bf16), w2_ref[...], preferred_element_type=f32) + b[1:2, :]
    h2 = jnp.maximum(h2, 0.0)                          # [Bt, E*H] f32

    # layer 3, computed transposed so the kernel writes the module's [E, B] layout
    # directly:  q_t[e, b] = sum_k w3t[e, k] * h2[b, k]  (NT matmul, MXU-native)
    q_t = jax.lax.dot_general(
        w3t_ref[...], h2.astype(bf16),
        dimension_numbers=(((1,), (1,)), ((), ())),
        preferred_element_type=f32)                    # [E, Bt]
    out_ref[...] = q_t + b[2:2 + E, 0:1]               # lane-broadcast [E, 1] bias


# ---------------------------------------------------------------------------
# Host-side weight fusion (one-time prep).
# ---------------------------------------------------------------------------
def _block_diag(w):
    """[E, I, O] per-ensemble weights -> [E*I, E*O] block-diagonal matrix."""
    E, I, O = w.shape
    eye = jnp.eye(E, dtype=w.dtype)
    return jnp.einsum('ef,eio->eifo', eye, w).reshape(E * I, E * O)


def fuse_params(params, state_dim):
    """Per-ensemble VectorizedLinear params -> fused lane-dense bf16 layout."""
    w1, b1, w2, b2, w3, b3 = params
    E, d_in, H = w1.shape
    EH = E * H

    # W1: [E, d_in, H] -> [d_in, E*H] (critics side-by-side), split state/action rows.
    w1f = jnp.transpose(w1, (1, 0, 2)).reshape(d_in, EH)
    w1s = w1f[:state_dim].astype(jnp.bfloat16)           # [state_dim,  E*H]
    w1a = w1f[state_dim:].astype(jnp.bfloat16)           # [action_dim, E*H]

    w2bd = _block_diag(w2).astype(jnp.bfloat16)           # [E*H, E*H]
    w3t = _block_diag(w3).T.astype(jnp.bfloat16)          # [E, E*H] (pre-transposed)

    # Pack all biases into one buffer (one DMA instead of three).
    biases = jnp.zeros((2 + E, EH), jnp.float32)
    biases = biases.at[0].set(b1.reshape(EH))
    biases = biases.at[1].set(b2.reshape(EH))
    biases = biases.at[2:, 0].set(b3.reshape(E))          # b3 stored column-wise

    return (w1s, w1a, w2bd, w3t, biases)


# ---------------------------------------------------------------------------
# Wrapper.  Returns q_values with shape [E, B] (matches VectorizedQ.forward).
# Note: to amortize fixed per-call cost, stack multiple evaluations along B
# (online + target nets, sampled actions) and make ONE call.
# ---------------------------------------------------------------------------
def vectorized_q_forward(state, action, fused_params, *, row_tile=256):
    w1s, w1a, w2bd, w3t, biases = fused_params
    state = state.astype(jnp.float32)
    action = action.astype(jnp.float32)
    B = state.shape[0]
    E = w3t.shape[0]
    out_shape = jax.ShapeDtypeStruct((E, B), jnp.float32)
    args = (state, action, w1s, w1a, w2bd, w3t, biases)

    if B >= 2 * row_tile and B % row_tile == 0:
        # Large-batch path: 1-D 'parallel' grid over B rows (lets v7x use both
        # TensorCores); weights/biases stay as full resident blocks.
        sdim, adim = state.shape[1], action.shape[1]
        full = lambda shp: pl.BlockSpec(shp, lambda i: tuple(0 for _ in shp))
        return pl.pallas_call(
            vectorized_q_kernel,
            out_shape=out_shape,
            grid_spec=pltpu.PrefetchScalarGridSpec(
                num_scalar_prefetch=0,
                grid=(B // row_tile,),
                in_specs=[pl.BlockSpec((row_tile, sdim), lambda i: (i, 0)),
                          pl.BlockSpec((row_tile, adim), lambda i: (i, 0)),
                          full(w1s.shape), full(w1a.shape),
                          full(w2bd.shape), full(w3t.shape), full(biases.shape)],
                out_specs=pl.BlockSpec((E, row_tile), lambda i: (0, i))),
            compiler_params=pltpu.CompilerParams(
                dimension_semantics=("parallel",)),
        )(*args)

    # Small-batch path (typical RL case): single invocation, no grid, everything
    # resident in VMEM (~75 KB of bf16 weights + tiny activations).
    vmem = pl.BlockSpec(memory_space=pltpu.MemorySpace.VMEM)
    return pl.pallas_call(
        vectorized_q_kernel,
        out_shape=out_shape,
        in_specs=[vmem] * 7,
        out_specs=vmem,
    )(*args)


# ---------------------------------------------------------------------------
# Parameter init mirroring VectorizedQ.__init__ (shapes + init scheme).
# ---------------------------------------------------------------------------
def init_params(key, state_dim, action_dim, hidden_dim, num_critics):
    d_in = state_dim + action_dim
    E, H = num_critics, hidden_dim
    k1, k2, k3, k4 = jax.random.split(key, 4)

    # kaiming_uniform_(a=sqrt(5)) -> bound = 1/sqrt(fan_in)
    bnd1 = 1.0 / math.sqrt(d_in)
    bnd2 = 1.0 / math.sqrt(H)
    w1 = jax.random.uniform(k1, (E, d_in, H), jnp.float32, -bnd1, bnd1)
    w2 = jax.random.uniform(k2, (E, H, H), jnp.float32, -bnd2, bnd2)
    # hidden biases set to constant 0.1 in VectorizedQ.__init__
    b1 = jnp.full((E, 1, H), 0.1, jnp.float32)
    b2 = jnp.full((E, 1, H), 0.1, jnp.float32)
    # final layer: uniform(-0.003, 0.003) for weight and bias
    w3 = jax.random.uniform(k3, (E, H, 1), jnp.float32, -0.003, 0.003)
    b3 = jax.random.uniform(k4, (E, 1, 1), jnp.float32, -0.003, 0.003)
    return (w1, b1, w2, b2, w3, b3)


def ref_forward(state, action, params):
    """Pure-JAX (f32) reference of the PyTorch forward pass."""
    w1, b1, w2, b2, w3, b3 = params
    x = jnp.concatenate([state, action], axis=-1)
    E = w1.shape[0]
    x = jnp.broadcast_to(x[None], (E,) + x.shape)                # repeat_interleave
    h = jnp.maximum(jnp.einsum('ebi,eio->ebo', x, w1) + b1, 0.0)
    h = jnp.maximum(jnp.einsum('ebi,eio->ebo', h, w2) + b2, 0.0)
    q = jnp.einsum('ebi,eio->ebo', h, w3) + b3
    return q[..., 0]                                             # squeeze(-1) -> [E, B]


if __name__ == "__main__":
    state_dim, action_dim = 12, 4
    hidden_dim, n_hidden, num_critics = 32, 2, 5   # n_hidden=2 as in the module
    batch = 8

    key = jax.random.PRNGKey(0)
    kp, ks, ka = jax.random.split(key, 3)
    params = init_params(kp, state_dim, action_dim, hidden_dim, num_critics)
    state = jax.random.normal(ks, (batch, state_dim), jnp.float32)
    action = jax.random.normal(ka, (batch, action_dim), jnp.float32)

    fused = fuse_params(params, state_dim)
    q_pallas = jax.block_until_ready(vectorized_q_forward(state, action, fused))
    q_ref = jax.block_until_ready(ref_forward(state, action, params))

    assert q_pallas.shape == (num_critics, batch)
    max_err = float(jnp.max(jnp.abs(q_pallas - q_ref)))
    # bf16 weights/activation casts -> loosened tolerance vs the f32 reference.
    assert jnp.allclose(q_pallas, q_ref, atol=1e-2, rtol=1e-2), (
        f"mismatch vs reference, max abs err {max_err}")
    print("KERNEL_OK")
</pallas_src>

<mosaic_0001>
module attributes {stable_mosaic.version = 11 : i64} {
  func.func @vectorized_q_kernel(%arg0: memref<8x12xf32, #tpu.memory_space<vmem>>, %arg1: memref<8x4xf32, #tpu.memory_space<vmem>>, %arg2: memref<12x160xbf16, #tpu.memory_space<vmem>>, %arg3: memref<4x160xbf16, #tpu.memory_space<vmem>>, %arg4: memref<160x160xbf16, #tpu.memory_space<vmem>>, %arg5: memref<5x160xbf16, #tpu.memory_space<vmem>>, %arg6: memref<7x160xf32, #tpu.memory_space<vmem>>, %arg7: memref<5x8xf32, #tpu.memory_space<vmem>>) attributes {dimension_semantics = [], scalar_prefetch = 0 : i64, scratch_operands = 0 : i64, tpu.core_type = #tpu.core_type<tc>} {
    %c0 = arith.constant 0 : index
    %c0_0 = arith.constant 0 : index
    %0 = vector.load %arg6[%c0, %c0_0] : memref<7x160xf32, #tpu.memory_space<vmem>>, vector<7x160xf32>
    %c0_1 = arith.constant 0 : index
    %c0_2 = arith.constant 0 : index
    %1 = vector.load %arg0[%c0_1, %c0_2] : memref<8x12xf32, #tpu.memory_space<vmem>>, vector<8x12xf32>
    %2 = arith.truncf %1 : vector<8x12xf32> to vector<8x12xbf16>
    %c0_3 = arith.constant 0 : index
    %c0_4 = arith.constant 0 : index
    %3 = vector.load %arg2[%c0_3, %c0_4] : memref<12x160xbf16, #tpu.memory_space<vmem>>, vector<12x160xbf16>
    %cst = arith.constant dense<0.000000e+00> : vector<8x160xf32>
    %4 = tpu.matmul %2, %3, %cst {dimension_numbers = #tpu.dot_dimension_numbers<[1], [0], [0], [1], [0, 0, 1, 1], [], []>} : vector<8x12xbf16>, vector<12x160xbf16>, vector<8x160xf32> -> vector<8x160xf32>
    %c0_5 = arith.constant 0 : index
    %c0_6 = arith.constant 0 : index
    %5 = vector.load %arg1[%c0_5, %c0_6] : memref<8x4xf32, #tpu.memory_space<vmem>>, vector<8x4xf32>
    %6 = arith.truncf %5 : vector<8x4xf32> to vector<8x4xbf16>
    %c0_7 = arith.constant 0 : index
    %c0_8 = arith.constant 0 : index
    %7 = vector.load %arg3[%c0_7, %c0_8] : memref<4x160xbf16, #tpu.memory_space<vmem>>, vector<4x160xbf16>
    %cst_9 = arith.constant dense<0.000000e+00> : vector<8x160xf32>
    %8 = tpu.matmul %6, %7, %cst_9 {dimension_numbers = #tpu.dot_dimension_numbers<[1], [0], [0], [1], [0, 0, 1, 1], [], []>} : vector<8x4xbf16>, vector<4x160xbf16>, vector<8x160xf32> -> vector<8x160xf32>
    %9 = arith.addf %4, %8 : vector<8x160xf32>
    %10 = vector.extract_strided_slice %0 {offsets = [0, 0], sizes = [1, 160], strides = [1, 1]} : vector<7x160xf32> to vector<1x160xf32>
    %11 = vector.broadcast %10 : vector<1x160xf32> to vector<8x160xf32>
    %12 = arith.addf %9, %11 : vector<8x160xf32>
    %cst_10 = arith.constant 0.000000e+00 : f32
    %13 = vector.broadcast %cst_10 : f32 to vector<8x160xf32>
    %14 = arith.maximumf %12, %13 : vector<8x160xf32>
    %15 = arith.truncf %14 : vector<8x160xf32> to vector<8x160xbf16>
    %c0_11 = arith.constant 0 : index
    %c0_12 = arith.constant 0 : index
    %16 = vector.load %arg4[%c0_11, %c0_12] : memref<160x160xbf16, #tpu.memory_space<vmem>>, vector<160x160xbf16>
    %cst_13 = arith.constant dense<0.000000e+00> : vector<8x160xf32>
    %17 = tpu.matmul %15, %16, %cst_13 {dimension_numbers = #tpu.dot_dimension_numbers<[1], [0], [0], [1], [0, 0, 1, 1], [], []>} : vector<8x160xbf16>, vector<160x160xbf16>, vector<8x160xf32> -> vector<8x160xf32>
    %18 = vector.extract_strided_slice %0 {offsets = [1, 0], sizes = [1, 160], strides = [1, 1]} : vector<7x160xf32> to vector<1x160xf32>
    %19 = vector.broadcast %18 : vector<1x160xf32> to vector<8x160xf32>
    %20 = arith.addf %17, %19 : vector<8x160xf32>
    %cst_14 = arith.constant 0.000000e+00 : f32
    %21 = vector.broadcast %cst_14 : f32 to vector<8x160xf32>
    %22 = arith.maximumf %20, %21 : vector<8x160xf32>
    %c0_15 = arith.constant 0 : index
    %c0_16 = arith.constant 0 : index
    %23 = vector.load %arg5[%c0_15, %c0_16] : memref<5x160xbf16, #tpu.memory_space<vmem>>, vector<5x160xbf16>
    %24 = arith.truncf %22 : vector<8x160xf32> to vector<8x160xbf16>
    %cst_17 = arith.constant dense<0.000000e+00> : vector<5x8xf32>
    %25 = tpu.matmul %23, %24, %cst_17 {dimension_numbers = #tpu.dot_dimension_numbers<[1], [1], [0], [0], [0, 0, 1, 0], [], []>} : vector<5x160xbf16>, vector<8x160xbf16>, vector<5x8xf32> -> vector<5x8xf32>
    %26 = vector.extract_strided_slice %0 {offsets = [2, 0], sizes = [5, 1], strides = [1, 1]} : vector<7x160xf32> to vector<5x1xf32>
    %27 = vector.broadcast %26 : vector<5x1xf32> to vector<5x8xf32>
    %28 = arith.addf %25, %27 : vector<5x8xf32>
    %c0_18 = arith.constant 0 : index
    %c0_19 = arith.constant 0 : index
    %29 = vector.load %arg7[%c0_18, %c0_19] : memref<5x8xf32, #tpu.memory_space<vmem>>, vector<5x8xf32>
    tpu.vector_store %arg7[%c0_18, %c0_19], %28 {strides = array<i32>} : memref<5x8xf32, #tpu.memory_space<vmem>>, vector<5x8xf32>,
    return
  }
}

</mosaic_0001>

<bundles_post_ra>
// kernel: tpu_custom_call.1
= control target key start
LH: loop header
LB: loop body
LE: loop exit
PB: predicated region body
PF: predicated region fallthrough
CT: control target
= control target key end

     0   :  { %12 = vsyncpa [#allocation3], 0  ;;  %s796_s0 = inlined_call_operand.hbm [shape: f32[8,12], index: 0, kind: input, shape index: {}]   ;;  %s797_s1 = inlined_call_operand.vmem [shape: f32[8,4], index: 1, kind: input, shape index: {}]   ;;  %s798_s2 = inlined_call_operand.vmem [shape: bf16[12,160], index: 2, kind: input, shape index: {}]   ;;  %s799_s3 = inlined_call_operand.hbm [shape: bf16[4,160], index: 3, kind: input, shape index: {}]   ;;  %s800_s4 = inlined_call_operand.hbm [shape: bf16[160,160], index: 4, kind: input, shape index: {}]   ;;  %s801_s5 = inlined_call_operand.hbm [shape: bf16[5,160], index: 5, kind: input, shape index: {}]   ;;  %s802_s6 = inlined_call_operand.vmem [shape: f32[7,160], index: 6, kind: input, shape index: {}]   ;;  %s803_s7 = inlined_call_operand.hbm [shape: f32[5,8], index: 7, kind: output, shape index: {}]  }
   0x1   :  { %13 = vsyncpa [#allocation6], 0 }
   0x2   :  { %14 = vsyncpa [#allocation9], 0 }
   0x3   :  { %15 = vsyncpa [#allocation4], 0  ;;  %s670_s24 = smov [#allocation5]   ;;  %s671_s26 = smov [#allocation2]  }
   0x4   :  { %s36_s25 = sshll.u32 %s670_s24, 4  ;;  %s22_s27 = sshll.u32 %s671_s26, 4  ;;  %s37_s25 = int_to_ptr.vmem [resolvable:$true] %s36_s25  ;;  %s23_s27 = int_to_ptr.vmem [resolvable:$true] %s22_s27 }
   0x5   :  { %s552_s30 = scalar_lea.hbm %s799_s3, 64 }
   0x6   :  { %p553_p0 = scmp.ne.s32.totalorder %s799_s3, %s552_s30  ;;  %p556_p1 = scmp.lt.u32.totalorder %s552_s30, %s799_s3 }
   0x8   :  { %p558_p2 = pnand %p556_p1, %p553_p0 }
   0xa   :  { %561 = shalt.err (!%p558_p2)
}
   0xb   :  { %s562_s12 = scalar_lea.vmem %s37_s25, 64  ;;  %p567_p4 = scmp.lt.s32.totalorder %s37_s25, %s37_s25 }
   0xc   :  { %p563_p3 = scmp.ne.s32.totalorder %s37_s25, %s562_s12  ;;  %p568_p5 = scmp.lt.s32.totalorder %s562_s12, %s562_s12 }
   0xe   :  { %p569_p6 = por %p568_p5, %p567_p4 }
  0x10   :  { %p570_p7 = pnand %p569_p6, %p563_p3 }
  0x12   :  { %573 = shalt.err (!%p570_p7)
}
  0x13   :  { %39 = dma.hbm_to_vmem [thread:$0]  %s799_s3, 64, %s37_s25, [#allocation6]  }
  0x14   :  { %s574_s17 = scalar_lea.hbm %s796_s0, 128 }
  0x15   :  { %p575_p8 = scmp.ne.s32.totalorder %s796_s0, %s574_s17  ;;  %p578_p9 = scmp.lt.u32.totalorder %s574_s17, %s796_s0 }
  0x17   :  { %p580_p10 = pnand %p578_p9, %p575_p8 }
  0x19   :  { %583 = shalt.err (!%p580_p10)
}
  0x1a   :  { %s584_s22 = scalar_lea.vmem %s23_s27, 128  ;;  %p589_p12 = scmp.lt.s32.totalorder %s23_s27, %s23_s27 }
  0x1b   :  { %p585_p11 = scmp.ne.s32.totalorder %s23_s27, %s584_s22  ;;  %p590_p13 = scmp.lt.s32.totalorder %s584_s22, %s584_s22 }
  0x1d   :  { %p591_p0 = por %p590_p13, %p589_p12 }
  0x1f   :  { %p592_p1 = pnand %p591_p0, %p585_p11 }
  0x21   :  { %595 = shalt.err (!%p592_p1)
}
  0x22   :  { %25 = dma.hbm_to_vmem [thread:$0]  %s796_s0, 128, %s23_s27, [#allocation3]  }
  0x23   :  { %s672_s24 = smov [#allocation7]   ;;  %s596_s29 = scalar_lea.hbm %s800_s4, 2560 }
  0x24   :  { %s45_s25 = sshll.u32 %s672_s24, 4  ;;  %p597_p2 = scmp.ne.s32.totalorder %s800_s4, %s596_s29  ;;  %s46_s25 = int_to_ptr.vmem [resolvable:$true] %s45_s25 }
  0x25   :  { %p600_p3 = scmp.lt.u32.totalorder %s596_s29, %s800_s4 }
  0x27   :  { %p602_p4 = pnand %p600_p3, %p597_p2 }
  0x29   :  { %605 = shalt.err (!%p602_p4)
}
  0x2a   :  { %s606_s11 = scalar_lea.vmem %s46_s25, 2560  ;;  %p611_p6 = scmp.lt.s32.totalorder %s46_s25, %s46_s25 }
  0x2b   :  { %p607_p5 = scmp.ne.s32.totalorder %s46_s25, %s606_s11  ;;  %p612_p7 = scmp.lt.s32.totalorder %s606_s11, %s606_s11 }
  0x2d   :  { %p613_p8 = por %p612_p7, %p611_p6 }
  0x2f   :  { %p614_p9 = pnand %p613_p8, %p607_p5 }
  0x31   :  { %617 = shalt.err (!%p614_p9)
}
  0x32   :  { %s673_s0 = smov 128   ;;  %s674_s27 = smov 8  }
  0x33   :  { %51 = dma.hbm_to_vmem [thread:$0]  %s800_s4, 2560, %s46_s25, [#allocation6], %s673_s0, %s673_s0, %s674_s27  }
  0x34   :  { %s675_s14 = smov [#allocation8]   ;;  %s618_s18 = scalar_lea.hbm %s801_s5, 128 }
  0x35   :  { %s58_s15 = sshll.u32 %s675_s14, 4  ;;  %p619_p10 = scmp.ne.s32.totalorder %s801_s5, %s618_s18  ;;  %s59_s15 = int_to_ptr.vmem [resolvable:$true] %s58_s15 }
  0x36   :  { %p622_p11 = scmp.lt.u32.totalorder %s618_s18, %s801_s5 }
  0x38   :  { %p624_p12 = pnand %p622_p11, %p619_p10 }
  0x3a   :  { %627 = shalt.err (!%p624_p12)
}
  0x3b   :  { %s628_s3 = scalar_lea.vmem %s59_s15, 128  ;;  %p633_p0 = scmp.lt.s32.totalorder %s59_s15, %s59_s15 }
  0x3c   :  { %p629_p13 = scmp.ne.s32.totalorder %s59_s15, %s628_s3  ;;  %p634_p1 = scmp.lt.s32.totalorder %s628_s3, %s628_s3 }
  0x3e   :  { %p635_p2 = por %p634_p1, %p633_p0 }
  0x40   :  { %p636_p3 = pnand %p635_p2, %p629_p13 }
  0x42   :  { %639 = shalt.err (!%p636_p3)
}
  0x43   :  { %61 = dma.hbm_to_vmem [thread:$0]  %s801_s5, 128, %s59_s15, [#allocation9]  }
  0x44   :  { %662 = dma.done.wait [#allocation3], 128  }
  0x45   :  { %663 = vsyncadd [#allocation3], 4294967168 }
  0x46   :  { %664 = dma.done.wait [#allocation6], 2624  }
  0x47   :  { %665 = vsyncadd [#allocation6], 4294964672 }
  0x48   :  { %666 = dma.done.wait [#allocation9], 128  }
  0x49   :  { %667 = vsyncadd [#allocation9], 4294967168  ;;  %v676_v0 = vmov 0   ;;  %vm99_vm0 = vcmask 1041408   ;;  %v83_v2 = vld [vmem:[%s797_s1] sm:$0xff]  ;;  %vm159_vm1 = vcmask 1045504   ;;  %v207_v30 = vlaneseq }
  0x4a   :  { %138 = vmatprep.mubr.bf16.mxu1 %v676_v0  ;;  %516 = vset.pattern.permute.xlu0 %v676_v0  ;;  %v476_v1 = vld.sshfl [vmem:[#allocation5] sm:$0x33 pattern:$0x76325410]  ;;  %v84_v7 = vpack.c.bf16 %v83_v2, %v83_v2  ;;  %v520_v8 = vld [vmem:[#allocation7 + $0x4] ss:$8 sps:$4 sm:$0xff]  }
  0x4b   :  { %v94_v3 = vcombine.high %v476_v1, %v476_v1  ;;  %v101_v4 = vsel %vm99_vm0, %v476_v1, 0  ;;  %v517_v5 = vld [vmem:[%s798_s2 + $0x4] ss:$8 sps:$4 sm:$0x3f]   ;;  %vm95_vm2 = vcmask 31744   ;;  %353 = vmatprep.subr.bf16.mxu0 %v520_v8  ;;  %vm155_vm3 = vcmask 97280  }
  0x4c   :  { %v519_v6 = vld [vmem:[%s798_s2] ss:$8 sps:$4 sm:$0x3f]   ;;  %v522_v9 = vld [vmem:[#allocation7] ss:$8 sps:$4 sm:$0xff]   ;;  %v208_v33 = vshrl.u32 %v207_v30, 7 }
  0x4d   :  { %477 = vmatprep.subr.msk.bf16.mxu1 %vm99_vm0, %v94_v3  ;;  %v523_v10 = vld [vmem:[#allocation7 + $0x14] ss:$8 sps:$4 sm:$0xff]   ;;  %v161_v11 = vsel %vm159_vm1, %v519_v6, 0  ;;  %354 = vmatpush1.bf16.msra.mxu0 %v522_v9  ;;  %v525_v12 = vld [vmem:[#allocation7 + $0x10] ss:$8 sps:$4 sm:$0xff]   ;;  %vm349_vm4 = vcmask 261120  }
  0x4e   :  { %107 = vmatpush1.bf16.msra.mxu1 %v101_v4  ;;  %355 = vmatprep.subr.bf16.mxu0 %v523_v10  ;;  %v526_v13 = vld [vmem:[#allocation7 + $0x24] ss:$8 sps:$4 sm:$0xff]   ;;  %v79_v14 = vld [vmem:[#allocation2] sm:$0xff]  ;;  %v528_v15 = vld [vmem:[#allocation7 + $0x20] ss:$8 sps:$4 sm:$0xff]   ;;  %v243_v34 = vsub.s32 1, %v208_v33 }
  0x4f   :  { %481 = vmatprep.subr.msk.bf16.mxu1 %vm159_vm1, %v517_v5  ;;  %v529_v16 = vld [vmem:[#allocation7 + $0x34] ss:$8 sps:$4 sm:$0xff]   ;;  %v80_v17 = vpack.c.bf16 %v79_v14, %v79_v14  ;;  %v531_v18 = vld [vmem:[#allocation7 + $0x30] ss:$8 sps:$4 sm:$0xff]   ;;  %v532_v19 = vld [vmem:[#allocation7 + $0x44] ss:$8 sps:$4 sm:$0xff]  }
  0x50   :  { %v534_v20 = vld [vmem:[#allocation7 + $0x40] ss:$8 sps:$4 sm:$0xff]   ;;  %v535_v21 = vld [vmem:[#allocation7 + $0x54] ss:$8 sps:$4 sm:$0xff]   ;;  %v537_v22 = vld [vmem:[#allocation7 + $0x50] ss:$8 sps:$4 sm:$0xff]  }
  0x51   :  { %478 = vmatmul.mubr.msk.bf16.vlgmr.msra.gmra.mrb[0].mxu1 %vm95_vm2, %v84_v7  ;;  %356 = vmatpush1.bf16.msra.mxu0 %v525_v12  ;;  %v538_v23 = vld [vmem:[#allocation7 + $0x64] ss:$8 sps:$4 sm:$0xff]   ;;  %v540_v24 = vld [vmem:[#allocation7 + $0x60] ss:$8 sps:$4 sm:$0xff]   ;;  %v541_v25 = vld [vmem:[#allocation7 + $0x74] ss:$8 sps:$4 sm:$0xff]  }
  0x52   :  { %167 = vmatpush1.bf16.msra.mxu1 %v161_v11  ;;  %198 = vmatprep.mubr.bf16.mxu1 %v676_v0  ;;  %v77_v26 = vld [vmem:[%s802_s6] sm:$0x7f]  ;;  %v544_v28 = vld [vmem:[#allocation7 + $0x84] ss:$8 sps:$4 sm:$0xff]   ;;  %v546_v29 = vld [vmem:[#allocation7 + $0x80] ss:$8 sps:$4 sm:$0xff]  }
  0x53   :  { %357 = vmatprep.subr.bf16.mxu0 %v526_v13  ;;  %401 = vperm.xlu0 %516, %v77_v26   ;;  %v543_v27 = vld [vmem:[#allocation7 + $0x70] ss:$8 sps:$4 sm:$0xff]   ;;  %v547_v31 = vld [vmem:[#allocation7 + $0x94] ss:$8 sps:$4 sm:$0xff]   ;;  %v244_v35 = vrot.slane %v77_v26, %v243_v34  ;;  %v209_v40 = vsub.s32 0, %v208_v33  ;;  %vm457_vm5 = vcmask 61440  }
  0x54   :  { %v549_v32 = vld [vmem:[#allocation7 + $0x90] ss:$8 sps:$4 sm:$0xff]   ;;  %v78_v41 = vld [vmem:[%s802_s6 + $0x8] sm:$0x7f]  ;;  %s677_s6 = smov [#allocation10]  }
  0x55   :  { %358 = vmatpush1.bf16.msra.mxu0 %v528_v15  ;;  %v210_v42 = vrot.slane %v77_v26, %v209_v40  ;;  %v214_v44 = vrot.slane %v78_v41, %v209_v40  ;;  %v396_v56 = vld [vmem:[#allocation8] sm:$0x77]  ;;  %v248_v58 = vrot.slane %v78_v41, %v243_v34  ;;  %s465_s9 = sshll.u32 %s677_s6, 4  ;;  %s466_s9 = int_to_ptr.vmem [resolvable:$true] %s465_s9 }
  0x56   :  { %359 = vmatprep.subr.bf16.mxu0 %v529_v16  ;;  %v505_v57 = vcombine.high %v396_v56, %v396_v56  ;;  %v504_v5 = vcombine.low %v396_v56, %v396_v56  ;;  %s640_s10 = scalar_lea.vmem %s466_s9, 128  ;;  %p645_p5 = scmp.lt.s32.totalorder %s466_s9, %s466_s9 }
  0x57   :  { %p641_p4 = scmp.ne.s32.totalorder %s466_s9, %s640_s10  ;;  %p646_p6 = scmp.lt.s32.totalorder %s640_s10, %s640_s10 }
  0x59   :  { %482 = vmatmul.mubr.msk.bf16.vlgmr.msra.gmra.mrb[4].mxu1 %vm155_vm3, %v80_v17  ;;  %360 = vmatpush1.bf16.msra.mxu0 %v531_v18  ;;  %p647_p7 = por %p646_p6, %p645_p5 }
  0x5a   :  { %361 = vmatprep.subr.bf16.mxu0 %v532_v19  ;;  %507 = vmatprep.mubr.msk.bf16.mxu1 %vm349_vm4, %v505_v57 }
  0x5b   :  { %p648_p8 = pnand %p647_p7, %p641_p4 }
  0x5d   :  { %362 = vmatpush1.bf16.msra.mxu0 %v534_v20 }
  0x5e   :  { %363 = vmatprep.subr.bf16.mxu0 %v535_v21 }
  0x61   :  { %364 = vmatpush1.bf16.msra.mxu0 %v537_v22 }
  0x62   :  { %365 = vmatprep.subr.bf16.mxu0 %v538_v23 }
  0x65   :  { %366 = vmatpush1.bf16.msra.mxu0 %v540_v24 }
  0x66   :  { %367 = vmatprep.subr.bf16.mxu0 %v541_v25 }
  0x69   :  { %368 = vmatpush1.bf16.msra.mxu0 %v543_v27 }
  0x6a   :  { %369 = vmatprep.subr.bf16.mxu0 %v544_v28 }
  0x6d   :  { %370 = vmatpush1.bf16.msra.mxu0 %v546_v29 }
  0x6e   :  { %371 = vmatprep.subr.bf16.mxu0 %v547_v31 }
  0x71   :  { %372 = vmatpush1.bf16.msra.mxu0 %v549_v32 }
  0xd2   :  { %v402_v6 = vpop.permute.xlu0 %401 }
  0xd3   :  { %v409_v7 = vrot.slane %v402_v6, 2 }
 0x124   :  { %v140_v36 = vpop.f32.mrb[0].mxu1 }
 0x125   :  { %v142_v37 = vpop.f32.mrb[1].mxu1 }
 0x126   :  { %v144_v38 = vpop.f32.mrb[2].mxu1 }
 0x127   :  { %v145_v39 = vpop.f32.mrb[3].mxu1 }
 0x12c   :  { %v200_v43 = vpop.f32.mrb[4].mxu1 }
 0x12d   :  { %v201_v45 = vadd.f32 %v200_v43, %v140_v36  ;;  %v202_v46 = vpop.f32.mrb[5].mxu1 }
 0x12e   :  { %v203_v47 = vadd.f32 %v202_v46, %v142_v37  ;;  %v204_v48 = vpop.f32.mrb[6].mxu1 }
 0x12f   :  { %v215_v49 = vadd.f32 %v210_v42, %v201_v45  ;;  %v205_v50 = vpop.f32.mrb[7].mxu1 }
 0x130   :  { %v216_v51 = vadd.f32 %v214_v44, %v203_v47 }
 0x131   :  { %v217_v52 = vmax.f32 %v215_v49, 0.0 }
 0x132   :  { %v218_v53 = vmax.f32 %v216_v51, 0.0 }
 0x133   :  { %v219_v55 = vpack.c.bf16 %v217_v52, %v217_v52 }
 0x134   :  { %v220_v54 = vpack.c.bf16 %v218_v53, %v218_v53 }
 0x136   :  { %503 = vmatprep.mubr.msk.bf16.mxu0 %vm349_vm4, %v220_v54 }
 0x137   :  { %386 = vmatmul.mubr.bf16.vlgmr.msra.gmra.mrb[0].mxu0 %v219_v55 }
 0x20a   :  { %v387_v59 = vpop.f32.mrb[0].mxu0 }
 0x20b   :  { %v388_v60 = vadd.f32 %v387_v59, %v244_v35  ;;  %v389_v61 = vpop.f32.mrb[1].mxu0 }
 0x20c   :  { %v390_v62 = vadd.f32 %v389_v61, %v248_v58  ;;  %v391_v63 = vpop.f32.mrb[2].mxu0 }
 0x20d   :  { %v394_v0 = vmax.f32 %v388_v60, 0.0  ;;  %v392_v1 = vpop.f32.mrb[3].mxu0 }
 0x20e   :  { %v395_v2 = vmax.f32 %v390_v62, 0.0 }
 0x20f   :  { %v397_v4 = vpack.c.bf16 %v394_v0, %v394_v0 }
 0x210   :  { %v398_v3 = vpack.c.bf16 %v395_v2, %v395_v2 }
 0x212   :  { %506 = vmatprep.subr.msk.bf16.mxu1 %vm349_vm4, %v398_v3 }
 0x213   :  { %418 = vmatpush1.bf16.xpose.msra.mxu1 %v397_v4 }
 0x21a   :  { %450 = vmatmul.mubr.bf16.vlgmr.msra.gmra.mrb[8].mxu1 %v504_v5 }
 0x2ed   :  { %v451_v8 = vpop.f32.mrb[8].mxu1 }
 0x2ee   :  { %v452_v9 = vadd.f32 %v451_v8, %v409_v7  ;;  %v453_v10 = vpop.f32.mrb[9].mxu1 }
 0x2ef   :  { %v454_v11 = vpop.f32.mrb[10].mxu1 }
 0x2f0   :  { %v455_v12 = vpop.f32.mrb[11].mxu1  ;;  %458 = vst.msk [vmem:[#allocation10] sm:$0x1f] %vm457_vm5, %v452_v9 }
 0x2f1   :  { %651 = shalt.err (!%p648_p8)
}
 0x2f2   :  { %s652_s27 = scalar_lea.hbm %s803_s7, 128 }
 0x2f3   :  { %p653_p9 = scmp.ne.s32.totalorder %s803_s7, %s652_s27  ;;  %p656_p10 = scmp.lt.u32.totalorder %s652_s27, %s803_s7 }
 0x2f5   :  { %p658_p11 = pnand %p656_p10, %p653_p9 }
 0x2f7   :  { %661 = shalt.err (!%p658_p11)
}
 0x2f8   :  { %468 = dma.vmem_to_hbm [thread:$0]  %s466_s9, 128, %s803_s7, [#allocation4]  }
 0x2f9   :  { %668 = dma.done.wait [#allocation4], 128  }
 0x2fa   :  { %669 = vsyncadd [#allocation4], 4294967168 }
 0x2fb   :  { %472 = vsyncpa [#allocation3], 1 }
 0x2fc   :  { %473 = vsyncpa [#allocation6], 1 }
 0x2fd   :  { %474 = vsyncpa [#allocation9], 1 }
 0x2fe   :  { %475 = vsyncpa [#allocation4], 1 }

</bundles_post_ra>
